<compile_context>
chip_gen: v6e
topology: v6e:2x2x1
jax: 0.10.0
libtpu: 0.0.40
codegen_flags: <defaults>
</compile_context>

<pallas_src>
import functools

import jax
import jax.numpy as jnp
from jax.experimental import pallas as pl
from jax.experimental.pallas import tpu as pltpu


def _round_up(v, m):
    return (v + m - 1) // m * m


def _pick_tm(Mp):
    """Generation-aware M tile: >= 2 pipelined grid steps per TensorCore."""
    kind = ""
    try:
        kind = jax.devices()[0].device_kind.lower()
    except Exception:  # pragma: no cover
        pass
    two_tc = ("v7" in kind) or ("7x" in kind)      # v7x: 2 TensorCores share the grid
    min_steps = 4 if two_tc else 2                 # grid length >= 2 * num_cores
    # Cap tile rows so (A bf16 + out f32) double-buffered stays << 64 MiB (v7x VMEM).
    target = max(128, min(Mp // min_steps, 2048))
    tm = 128
    for cand in range(256, target + 1, 128):
        if Mp % cand == 0:
            tm = cand
    return tm


# ---------------------------------------------------------------------------
# Pallas kernel: one lane-dense bf16 GEMM, f32 MXU accumulation (bias lives in W)
# ---------------------------------------------------------------------------
def _gemm_kernel(a_ref, w_ref, o_ref):
    o_ref[...] = jnp.dot(a_ref[...], w_ref[...],
                         preferred_element_type=jnp.float32)


def pallas_gemm(a, w2):
    """a: (Mp, Kp) bf16, w2: (Kp, Np) bf16 -> (Mp, Np) f32. Dims are multiples of 128."""
    Mp, Kp = a.shape
    Kp2, Np = w2.shape
    assert Kp == Kp2
    assert Mp % 128 == 0 and Kp % 128 == 0 and Np % 128 == 0

    tm = _pick_tm(Mp)
    grid = (Mp // tm,)

    cost = pl.CostEstimate(
        flops=2 * Mp * Kp * Np,
        transcendentals=0,
        bytes_accessed=(Mp * Kp * a.dtype.itemsize
                        + Kp * Np * w2.dtype.itemsize
                        + Mp * Np * 4),
    )
    compiler_params = pltpu.CompilerParams(
        dimension_semantics=("parallel",),          # shard M tiles over v7x's 2 TCs
        vmem_limit_bytes=32 * 1024 * 1024,          # <= half of v7x's 64 MiB physical VMEM
    )
    return pl.pallas_call(
        _gemm_kernel,
        out_shape=jax.ShapeDtypeStruct((Mp, Np), jnp.float32),
        grid=grid,
        in_specs=[pl.BlockSpec((tm, Kp), lambda i: (i, 0)),
                  pl.BlockSpec((Kp, Np), lambda i: (0, 0))],   # weights resident
        out_specs=pl.BlockSpec((tm, Np), lambda i: (i, 0)),
        compiler_params=compiler_params,
        cost_estimate=cost,
    )(a, w2)


# ---------------------------------------------------------------------------
# Forward: layout glue (fused in the same jit) + single Pallas GEMM
# ---------------------------------------------------------------------------
@functools.partial(jax.jit, static_argnames=("stride",))
def conv3d_forward(x, w, b, stride):
    """Conv3D_.forward for the non-transposed branch with act_norm=False.

    x: (B, T, C, H, W) f32
    w: (C_out, C_in, 3, 3, 3) f32   (PyTorch Conv3d weight layout)
    b: (C_out,) f32
    returns (B, T', C_out, H', W') f32  (already permuted back, like the module)
    """
    B, T, C, H, W = x.shape
    C_out, C_in, kT, kH, kW = w.shape
    assert C_in == C
    sT, sH, sW = stride
    pT = pH = pW = 1
    To = (T + 2 * pT - kT) // sT + 1
    Ho = (H + 2 * pH - kH) // sH + 1
    Wo = (W + 2 * pW - kW) // sW + 1
    M = B * To * Ho * Wo
    n_taps = kT * kH * kW
    K_real = n_taps * C
    Kp = _round_up(K_real + 1, 128)        # +1 column of ones carries the bias
    Np = _round_up(C_out, 128)
    Mp = _round_up(M, 128)

    # Channels-last + bf16 cast (MXU-native operands) + spatial zero padding.
    x_cl = jnp.transpose(x, (0, 1, 3, 4, 2)).astype(jnp.bfloat16)   # (B, T, H, W, C)
    xp = jnp.pad(x_cl, ((0, 0), (pT, pT), (pH, pH), (pW, pW), (0, 0)))

    # im2col: the SAME stack appends the bias ones-tap and the zero K-padding taps, so
    # the lane-dense (M, Kp) A matrix is materialized exactly once (no at[].set / pad).
    taps = []
    for kt in range(kT):
        for kh in range(kH):
            for kw in range(kW):
                taps.append(xp[:,
                               kt:kt + (To - 1) * sT + 1:sT,
                               kh:kh + (Ho - 1) * sH + 1:sH,
                               kw:kw + (Wo - 1) * sW + 1:sW, :])
    if Kp % C == 0:
        n_extra = Kp // C - n_taps                          # 1 ones tap + zero taps
        taps = taps + [jnp.ones_like(taps[0])] + [jnp.zeros_like(taps[0])] * (n_extra - 1)
        a = jnp.stack(taps, axis=-2).reshape(M, Kp)         # (M, 128) bf16, lane-dense
    else:  # generic fallback (not hit for these shapes)
        patches = jnp.stack(taps, axis=-2).reshape(M, K_real)
        a = jnp.concatenate(
            [patches,
             jnp.ones((M, 1), patches.dtype),
             jnp.zeros((M, Kp - K_real - 1), patches.dtype)], axis=1)
    if Mp != M:
        a = jnp.pad(a, ((0, Mp - M), (0, 0)))

    # Weights: tap-major rows matching the A column order; bias folded into row K_real
    # (the ones column). Remaining pad rows are zero, so the extra ones columns of the
    # ones-tap contribute nothing.
    w2 = jnp.transpose(w, (2, 3, 4, 1, 0)).reshape(K_real, C_out)
    w_rows = jnp.concatenate(
        [w2, b[None, :], jnp.zeros((Kp - K_real - 1, C_out), w2.dtype)], axis=0)
    w_pad = jnp.pad(w_rows, ((0, 0), (0, Np - C_out))).astype(jnp.bfloat16)

    # The one compute hot path: a single fused Pallas GEMM (bias included).
    out = pallas_gemm(a, w_pad)                             # (Mp, Np) f32, unmasked vst

    # Module contract: (B, T', C_out, H', W').  In a conv stack, keep the GEMM's
    # channels-last layout between layers and skip this slice + transpose instead.
    out = out[:M, :C_out].reshape(B, To, Ho, Wo, C_out)
    return jnp.transpose(out, (0, 1, 4, 2, 3))


if __name__ == "__main__":
    # Conv3D_(in_shape=(8, 4, 16, 16), out_shape=(8, 8, 8, 8)):
    #   transposeT=False, transposeS=False, strideT=1, strideS=2
    #   -> Conv3d(4, 8, kernel_size=3, stride=(1, 2, 2), padding=1), act_norm=False
    # TODO(synk): ConvTranspose3d branch (out_shape > in_shape) and act_norm=True
    #             (GroupNorm + LeakyReLU) epilogue are not implemented here.
    B = 2
    T, C_in, H, W = 8, 4, 16, 16          # in_shape
    To_, C_out, Ho_, Wo_ = 8, 8, 8, 8     # out_shape
    stride = (1, 2, 2)
    kT = kH = kW = 3

    key = jax.random.PRNGKey(0)
    kx, kwt, kbs = jax.random.split(key, 3)
    x = jax.random.normal(kx, (B, T, C_in, H, W), jnp.float32)

    fan_in = C_in * kT * kH * kW
    bound = 1.0 / (fan_in ** 0.5)
    w = jax.random.uniform(kwt, (C_out, C_in, kT, kH, kW), jnp.float32, -bound, bound)
    b = jax.random.uniform(kbs, (C_out,), jnp.float32, -bound, bound)

    out = conv3d_forward(x, w, b, stride)
    out = jax.block_until_ready(out)
    assert out.shape == (B, To_, C_out, Ho_, Wo_), out.shape

    # Reference #1: same arithmetic as the kernel (bf16 operands, f32 accumulation).
    x_bf = jnp.transpose(x, (0, 2, 1, 3, 4)).astype(jnp.bfloat16)
    w_bf = w.astype(jnp.bfloat16)
    ref_bf = jax.lax.conv_general_dilated(
        x_bf, w_bf, window_strides=stride,
        padding=((1, 1), (1, 1), (1, 1)),
        dimension_numbers=("NCDHW", "OIDHW", "NCDHW"),
        preferred_element_type=jnp.float32)
    ref_bf = ref_bf + b.astype(jnp.bfloat16).astype(jnp.float32)[None, :, None, None, None]
    ref_bf = jnp.transpose(ref_bf, (0, 2, 1, 3, 4))
    err_bf = float(jnp.max(jnp.abs(out - ref_bf)))
    assert jnp.allclose(out, ref_bf, atol=1e-3, rtol=1e-3), err_bf

    # Reference #2: the module's f32 semantics at HIGHEST precision (looser tolerance
    # for the bf16 operand cast; accumulation over K=108 stays f32).
    ref32 = jax.lax.conv_general_dilated(
        jnp.transpose(x, (0, 2, 1, 3, 4)), w, window_strides=stride,
        padding=((1, 1), (1, 1), (1, 1)),
        dimension_numbers=("NCDHW", "OIDHW", "NCDHW"),
        precision=jax.lax.Precision.HIGHEST)
    ref32 = ref32 + b[None, :, None, None, None]
    ref32 = jnp.transpose(ref32, (0, 2, 1, 3, 4))
    err32 = float(jnp.max(jnp.abs(out - ref32)))
    assert jnp.allclose(out, ref32, atol=2e-2, rtol=2e-2), err32

    print("KERNEL_OK")
</pallas_src>

<mosaic_0001>
module attributes {stable_mosaic.version = 11 : i64} {
  func.func @_gemm_kernel(%arg0: i32, %arg1: memref<512x128xbf16, #tpu.memory_space<vmem>>, %arg2: memref<128x128xbf16, #tpu.memory_space<vmem>>, %arg3: memref<512x128xf32, #tpu.memory_space<vmem>>) attributes {dimension_semantics = [#tpu.dimension_semantics<parallel>], iteration_bounds = array<i64: 2>, scalar_prefetch = 0 : i64, scratch_operands = 0 : i64, tpu.core_type = #tpu.core_type<tc>, window_params = [{transform_indices = @transform_0, window_bounds = array<i64: 512, 128>}, {pipeline_mode = #tpu.pipeline_mode<synchronous>, transform_indices = @transform_1, window_bounds = array<i64: 128, 128>}, {transform_indices = @transform_2, window_bounds = array<i64: 512, 128>}]} {
    %c0 = arith.constant 0 : index
    %c0_0 = arith.constant 0 : index
    %0 = vector.load %arg1[%c0, %c0_0] : memref<512x128xbf16, #tpu.memory_space<vmem>>, vector<512x128xbf16>
    %c0_1 = arith.constant 0 : index
    %c0_2 = arith.constant 0 : index
    %1 = vector.load %arg2[%c0_1, %c0_2] : memref<128x128xbf16, #tpu.memory_space<vmem>>, vector<128x128xbf16>
    %cst = arith.constant dense<0.000000e+00> : vector<512x128xf32>
    %2 = tpu.matmul %0, %1, %cst {dimension_numbers = #tpu.dot_dimension_numbers<[1], [0], [0], [1], [0, 0, 1, 1], [], []>} : vector<512x128xbf16>, vector<128x128xbf16>, vector<512x128xf32> -> vector<512x128xf32>
    %c0_3 = arith.constant 0 : index
    %c0_4 = arith.constant 0 : index
    %3 = vector.load %arg3[%c0_3, %c0_4] : memref<512x128xf32, #tpu.memory_space<vmem>>, vector<512x128xf32>
    tpu.vector_store %arg3[%c0_3, %c0_4], %2 {strides = array<i32>} : memref<512x128xf32, #tpu.memory_space<vmem>>, vector<512x128xf32>,
    return
  }
  func.func @transform_0(%arg0: i32) -> (i32, i32) {
    %c0_i32 = arith.constant 0 : i32
    %c0_i32_0 = arith.constant 0 : i32
    return %arg0, %c0_i32 : i32, i32
  }
  func.func @transform_1(%arg0: i32) -> (i32, i32) {
    %c0_i32 = arith.constant 0 : i32
    %c0_i32_0 = arith.constant 0 : i32
    %c0_i32_1 = arith.constant 0 : i32
    return %c0_i32, %c0_i32_0 : i32, i32
  }
  func.func @transform_2(%arg0: i32) -> (i32, i32) {
    %c0_i32 = arith.constant 0 : i32
    %c0_i32_0 = arith.constant 0 : i32
    return %arg0, %c0_i32 : i32, i32
  }
}

</mosaic_0001>

<bundles_post_ra>
// kernel: conv3d_forward.1
= control target key start
LH: loop header
LB: loop body
LE: loop exit
PB: predicated region body
PF: predicated region fallthrough
CT: control target
= control target key end

     0   :  { %s1135_s9 = smov 0   ;;  %s1280_s0 = inlined_call_operand.vmem [shape: bf16[1024,128], index: 0, kind: input, shape index: {}]   ;;  %s1281_s1 = inlined_call_operand.vmem [shape: bf16[128,128], index: 1, kind: input, shape index: {}]   ;;  %s1282_s2 = inlined_call_operand.vmem [shape: f32[1024,128], index: 2, kind: output, shape index: {}]  }
   0x1 LB: > { %s877_s10 = sadd.s32 4294967295, %s1118_s9   ;;  %p881_p0 = scmp.ge.s32.totalorder %s1118_s9, 1  ;;  %s1118_s9 = sphi %s1135_s9, %s12_s9  }
   0x2   : > { %p113_p1 = scmp.lt.s32.totalorder %s1118_s9, 3 }
   0x4   : > { %p114_p2 = pnand %p881_p0, %p113_p1 }
   0x5   : > { %s882_s13 = sshll.u32 (!%p114_p2), %s877_s10, 6 }
   0x6   : > { %117 = sbr.rel (%p114_p2) target bundleno = 300 (0x12c), region = 28  ;;  %p136_p3 = scmp.lt.s32.totalorder (!%p114_p2), %s882_s13, 127 }
   0xb   : > { %v1072_v0 = vld [vmem:[%s1281_s1 + $0x38] sm:$0xff]   ;;  %v1073_v1 = vld [vmem:[%s1281_s1 + $0x30] sm:$0xff]   ;;  %s1284_s13 = smov (!%p136_p3, %s882_s13), 127  ;;  %v1074_v2 = vld [vmem:[%s1281_s1 + $0x28] sm:$0xff]  }
   0xc   : > { %968 = vmatprep.subr.bf16.mxu0 %v1072_v0  ;;  %1048 = vmatprep.subr.bf16.mxu1 %v1072_v0  ;;  %s883_s18 = sshll.u32 %s1284_s13, 2  ;;  %v1075_v3 = vld [vmem:[%s1281_s1 + $0x20] sm:$0xff]   ;;  %v1076_v6 = vld [vmem:[%s1281_s1 + $0x18] sm:$0xff]   ;;  %v1077_v7 = vld [vmem:[%s1281_s1 + $0x10] sm:$0xff]   ;;  %s885_s4 = sshll.u32 %s1284_s13, 3 }
   0xd   : > { %969 = vmatpush3.bf16.msra.mxu0 %v1072_v0  ;;  %1056 = vmatpush3.bf16.msra.mxu1 %v1072_v0  ;;  %s1158_s21 = scalar_lea.vmem %s1280_s0, %s883_s18  ;;  %v1078_v8 = vld [vmem:[%s1281_s1 + $0x8] sm:$0xff]   ;;  %v1079_v9 = vld [vmem:[%s1281_s1] sm:$0xff]   ;;  %s1211_s7 = scalar_lea.vmem %s1282_s2, %s885_s4 }
   0xe   : > { %970 = vmatprep.subr.bf16.mxu0 %v1073_v1  ;;  %1049 = vmatprep.subr.bf16.mxu1 %v1073_v1  ;;  %v1080_v4 = vld [vmem:[%s1158_s21] sm:$0xff]   ;;  %v1082_v10 = vld [vmem:[%s1158_s21 + $0x8] sm:$0xff]   ;;  %v1084_v12 = vld [vmem:[%s1158_s21 + $0x10] sm:$0xff]  }
   0xf   : > { %v1081_v5 = vld [vmem:[%s1158_s21 + $0x80] sm:$0xff]   ;;  %984 = vmatprep.mubr.bf16.mxu0 %v1080_v4  ;;  %v1083_v11 = vld [vmem:[%s1158_s21 + $0x88] sm:$0xff]   ;;  %v1085_v13 = vld [vmem:[%s1158_s21 + $0x90] sm:$0xff]  }
  0x10   : > { %1016 = vmatprep.mubr.bf16.mxu1 %v1081_v5  ;;  %v1086_v14 = vld [vmem:[%s1158_s21 + $0x18] sm:$0xff]   ;;  %v1088_v16 = vld [vmem:[%s1158_s21 + $0x20] sm:$0xff]   ;;  %v1090_v18 = vld [vmem:[%s1158_s21 + $0x28] sm:$0xff]  }
  0x11   : > { %971 = vmatpush3.bf16.msra.mxu0 %v1073_v1  ;;  %1057 = vmatpush3.bf16.msra.mxu1 %v1073_v1  ;;  %v1087_v15 = vld [vmem:[%s1158_s21 + $0x98] sm:$0xff]   ;;  %v1089_v17 = vld [vmem:[%s1158_s21 + $0xa0] sm:$0xff]   ;;  %v1091_v19 = vld [vmem:[%s1158_s21 + $0xa8] sm:$0xff]  }
  0x12   : > { %972 = vmatprep.subr.bf16.mxu0 %v1074_v2  ;;  %1050 = vmatprep.subr.bf16.mxu1 %v1074_v2  ;;  %v1092_v20 = vld [vmem:[%s1158_s21 + $0x30] sm:$0xff]   ;;  %v1094_v22 = vld [vmem:[%s1158_s21 + $0x38] sm:$0xff]   ;;  %v1096_v24 = vld [vmem:[%s1158_s21 + $0x40] sm:$0xff]  }
  0x13   : > { %v1093_v21 = vld [vmem:[%s1158_s21 + $0xb0] sm:$0xff]   ;;  %v1095_v23 = vld [vmem:[%s1158_s21 + $0xb8] sm:$0xff]   ;;  %v1097_v25 = vld [vmem:[%s1158_s21 + $0xc0] sm:$0xff]  }
  0x14   : > { %v1098_v26 = vld [vmem:[%s1158_s21 + $0x48] sm:$0xff]   ;;  %v1100_v28 = vld [vmem:[%s1158_s21 + $0x50] sm:$0xff]   ;;  %v1102_v30 = vld [vmem:[%s1158_s21 + $0x58] sm:$0xff]  }
  0x15   : > { %973 = vmatpush3.bf16.msra.mxu0 %v1074_v2  ;;  %1058 = vmatpush3.bf16.msra.mxu1 %v1074_v2  ;;  %v1099_v27 = vld [vmem:[%s1158_s21 + $0xc8] sm:$0xff]   ;;  %v1101_v29 = vld [vmem:[%s1158_s21 + $0xd0] sm:$0xff]   ;;  %v1103_v31 = vld [vmem:[%s1158_s21 + $0xd8] sm:$0xff]  }
  0x16   : > { %974 = vmatprep.subr.bf16.mxu0 %v1075_v3  ;;  %1051 = vmatprep.subr.bf16.mxu1 %v1075_v3  ;;  %v1104_v32 = vld [vmem:[%s1158_s21 + $0x60] sm:$0xff]   ;;  %v1106_v34 = vld [vmem:[%s1158_s21 + $0x68] sm:$0xff]   ;;  %v1108_v36 = vld [vmem:[%s1158_s21 + $0x70] sm:$0xff]  }
  0x17   : > { %v1105_v33 = vld [vmem:[%s1158_s21 + $0xe0] sm:$0xff]   ;;  %v1107_v35 = vld [vmem:[%s1158_s21 + $0xe8] sm:$0xff]   ;;  %v1109_v37 = vld [vmem:[%s1158_s21 + $0xf0] sm:$0xff]  }
  0x18   : > { %v1110_v38 = vld [vmem:[%s1158_s21 + $0x78] sm:$0xff]  }
  0x19   : > { %975 = vmatpush3.bf16.msra.mxu0 %v1075_v3  ;;  %1059 = vmatpush3.bf16.msra.mxu1 %v1075_v3  ;;  %v1111_v39 = vld [vmem:[%s1158_s21 + $0xf8] sm:$0xff]  }
  0x1a   : > { %976 = vmatprep.subr.bf16.mxu0 %v1076_v6  ;;  %1052 = vmatprep.subr.bf16.mxu1 %v1076_v6 }
  0x1d   : > { %977 = vmatpush3.bf16.msra.mxu0 %v1076_v6  ;;  %1060 = vmatpush3.bf16.msra.mxu1 %v1076_v6 }
  0x1e   : > { %978 = vmatprep.subr.bf16.mxu0 %v1077_v7  ;;  %1053 = vmatprep.subr.bf16.mxu1 %v1077_v7 }
  0x21   : > { %979 = vmatpush3.bf16.msra.mxu0 %v1077_v7  ;;  %1061 = vmatpush3.bf16.msra.mxu1 %v1077_v7 }
  0x22   : > { %980 = vmatprep.subr.bf16.mxu0 %v1078_v8  ;;  %1054 = vmatprep.subr.bf16.mxu1 %v1078_v8 }
  0x25   : > { %981 = vmatpush3.bf16.msra.mxu0 %v1078_v8  ;;  %1062 = vmatpush3.bf16.msra.mxu1 %v1078_v8 }
  0x26   : > { %982 = vmatprep.subr.bf16.mxu0 %v1079_v9  ;;  %1055 = vmatprep.subr.bf16.mxu1 %v1079_v9 }
  0x29   : > { %983 = vmatpush3.bf16.msra.mxu0 %v1079_v9  ;;  %1063 = vmatpush3.bf16.msra.mxu1 %v1079_v9 }
  0x2c   : > { %985 = vmatmul.mubr.bf16.vlgmr.msra.gmra.mxu0 %v1082_v10  ;;  %1017 = vmatmul.mubr.bf16.vlgmr.msra.gmra.mxu1 %v1083_v11 }
  0x2d   : > { %988 = vmatprep.mubr.bf16.mxu0 %v1084_v12  ;;  %1020 = vmatprep.mubr.bf16.mxu1 %v1085_v13 }
  0x34   : > { %989 = vmatmul.mubr.bf16.gmra.mxu0 %v1086_v14  ;;  %1021 = vmatmul.mubr.bf16.gmra.mxu1 %v1087_v15 }
  0x35   : > { %992 = vmatprep.mubr.bf16.mxu0 %v1088_v16  ;;  %1024 = vmatprep.mubr.bf16.mxu1 %v1089_v17 }
  0x3c   : > { %993 = vmatmul.mubr.bf16.gmra.mxu0 %v1090_v18  ;;  %1025 = vmatmul.mubr.bf16.gmra.mxu1 %v1091_v19 }
  0x3d   : > { %996 = vmatprep.mubr.bf16.mxu0 %v1092_v20  ;;  %1028 = vmatprep.mubr.bf16.mxu1 %v1093_v21 }
  0x44   : > { %997 = vmatmul.mubr.bf16.gmra.mxu0 %v1094_v22  ;;  %1029 = vmatmul.mubr.bf16.gmra.mxu1 %v1095_v23 }
  0x45   : > { %1000 = vmatprep.mubr.bf16.mxu0 %v1096_v24  ;;  %1032 = vmatprep.mubr.bf16.mxu1 %v1097_v25 }
  0x4c   : > { %1001 = vmatmul.mubr.bf16.gmra.mxu0 %v1098_v26  ;;  %1033 = vmatmul.mubr.bf16.gmra.mxu1 %v1099_v27 }
  0x4d   : > { %1004 = vmatprep.mubr.bf16.mxu0 %v1100_v28  ;;  %1036 = vmatprep.mubr.bf16.mxu1 %v1101_v29 }
  0x54   : > { %1005 = vmatmul.mubr.bf16.gmra.mxu0 %v1102_v30  ;;  %1037 = vmatmul.mubr.bf16.gmra.mxu1 %v1103_v31 }
  0x55   : > { %1008 = vmatprep.mubr.bf16.mxu0 %v1104_v32  ;;  %1040 = vmatprep.mubr.bf16.mxu1 %v1105_v33 }
  0x5c   : > { %1009 = vmatmul.mubr.bf16.gmra.mxu0 %v1106_v34  ;;  %1041 = vmatmul.mubr.bf16.gmra.mxu1 %v1107_v35 }
  0x5d   : > { %1012 = vmatprep.mubr.bf16.mxu0 %v1108_v36  ;;  %1044 = vmatprep.mubr.bf16.mxu1 %v1109_v37 }
  0x64   : > { %1013 = vmatmul.mubr.bf16.gmra.mxu0 %v1110_v38  ;;  %1045 = vmatmul.mubr.bf16.gmra.mxu1 %v1111_v39 }
  0xec   : > { %v986_v40 = vpop.f32.mrf.mxu0  ;;  %v1018_v41 = vpop.f32.mrf.mxu1 }
  0xed   : > { %759 = vst [vmem:[%s1211_s7 + $0x10] sm:$0xff] %v986_v40  ;;  %791 = vst [vmem:[%s1211_s7 + $0x110] sm:$0xff] %v1018_v41 }
  0xee   : > { %v502_v42 = vpop.f32.mrf.mxu0  ;;  %v630_v43 = vpop.f32.mrf.mxu1 }
  0xef   : > { %757 = vst [vmem:[%s1211_s7] sm:$0xff] %v502_v42  ;;  %789 = vst [vmem:[%s1211_s7 + $0x100] sm:$0xff] %v630_v43 }
  0xf0   : > { %v987_v44 = vpop.f32.mrf.mxu0  ;;  %v1019_v45 = vpop.f32.mrf.mxu1 }
  0xf1   : > { %760 = vst [vmem:[%s1211_s7 + $0x18] sm:$0xff] %v987_v44  ;;  %792 = vst [vmem:[%s1211_s7 + $0x118] sm:$0xff] %v1019_v45 }
  0xf2   : > { %v505_v46 = vpop.f32.mrf.mxu0  ;;  %v633_v47 = vpop.f32.mrf.mxu1 }
  0xf3   : > { %758 = vst [vmem:[%s1211_s7 + $0x8] sm:$0xff] %v505_v46  ;;  %790 = vst [vmem:[%s1211_s7 + $0x108] sm:$0xff] %v633_v47 }
  0xf4   : > { %v990_v48 = vpop.f32.mrf.mxu0  ;;  %v1022_v49 = vpop.f32.mrf.mxu1 }
  0xf5   : > { %763 = vst [vmem:[%s1211_s7 + $0x30] sm:$0xff] %v990_v48  ;;  %795 = vst [vmem:[%s1211_s7 + $0x130] sm:$0xff] %v1022_v49 }
  0xf6   : > { %v518_v50 = vpop.f32.mrf.mxu0  ;;  %v646_v51 = vpop.f32.mrf.mxu1 }
  0xf7   : > { %761 = vst [vmem:[%s1211_s7 + $0x20] sm:$0xff] %v518_v50  ;;  %793 = vst [vmem:[%s1211_s7 + $0x120] sm:$0xff] %v646_v51 }
  0xf8   : > { %v991_v52 = vpop.f32.mrf.mxu0  ;;  %v1023_v53 = vpop.f32.mrf.mxu1 }
  0xf9   : > { %764 = vst [vmem:[%s1211_s7 + $0x38] sm:$0xff] %v991_v52  ;;  %796 = vst [vmem:[%s1211_s7 + $0x138] sm:$0xff] %v1023_v53 }
  0xfa   : > { %v521_v54 = vpop.f32.mrf.mxu0  ;;  %v649_v55 = vpop.f32.mrf.mxu1 }
  0xfb   : > { %762 = vst [vmem:[%s1211_s7 + $0x28] sm:$0xff] %v521_v54  ;;  %794 = vst [vmem:[%s1211_s7 + $0x128] sm:$0xff] %v649_v55 }
  0xfc   : > { %v994_v56 = vpop.f32.mrf.mxu0  ;;  %v1026_v57 = vpop.f32.mrf.mxu1 }
  0xfd   : > { %767 = vst [vmem:[%s1211_s7 + $0x50] sm:$0xff] %v994_v56  ;;  %799 = vst [vmem:[%s1211_s7 + $0x150] sm:$0xff] %v1026_v57 }
  0xfe   : > { %v534_v58 = vpop.f32.mrf.mxu0  ;;  %v662_v59 = vpop.f32.mrf.mxu1 }
  0xff   : > { %765 = vst [vmem:[%s1211_s7 + $0x40] sm:$0xff] %v534_v58  ;;  %797 = vst [vmem:[%s1211_s7 + $0x140] sm:$0xff] %v662_v59 }
 0x100   : > { %v995_v60 = vpop.f32.mrf.mxu0  ;;  %v1027_v61 = vpop.f32.mrf.mxu1 }
 0x101   : > { %768 = vst [vmem:[%s1211_s7 + $0x58] sm:$0xff] %v995_v60  ;;  %800 = vst [vmem:[%s1211_s7 + $0x158] sm:$0xff] %v1027_v61 }
 0x102   : > { %v537_v62 = vpop.f32.mrf.mxu0  ;;  %v665_v63 = vpop.f32.mrf.mxu1 }
 0x103   : > { %766 = vst [vmem:[%s1211_s7 + $0x48] sm:$0xff] %v537_v62  ;;  %798 = vst [vmem:[%s1211_s7 + $0x148] sm:$0xff] %v665_v63 }
 0x104   : > { %v998_v0 = vpop.f32.mrf.mxu0  ;;  %v1030_v1 = vpop.f32.mrf.mxu1 }
 0x105   : > { %771 = vst [vmem:[%s1211_s7 + $0x70] sm:$0xff] %v998_v0  ;;  %803 = vst [vmem:[%s1211_s7 + $0x170] sm:$0xff] %v1030_v1 }
 0x106   : > { %v550_v2 = vpop.f32.mrf.mxu0  ;;  %v678_v3 = vpop.f32.mrf.mxu1 }
 0x107   : > { %769 = vst [vmem:[%s1211_s7 + $0x60] sm:$0xff] %v550_v2  ;;  %801 = vst [vmem:[%s1211_s7 + $0x160] sm:$0xff] %v678_v3 }
 0x108   : > { %v999_v4 = vpop.f32.mrf.mxu0  ;;  %v1031_v5 = vpop.f32.mrf.mxu1 }
 0x109   : > { %772 = vst [vmem:[%s1211_s7 + $0x78] sm:$0xff] %v999_v4  ;;  %804 = vst [vmem:[%s1211_s7 + $0x178] sm:$0xff] %v1031_v5 }
 0x10a   : > { %v553_v6 = vpop.f32.mrf.mxu0  ;;  %v681_v7 = vpop.f32.mrf.mxu1 }
 0x10b   : > { %770 = vst [vmem:[%s1211_s7 + $0x68] sm:$0xff] %v553_v6  ;;  %802 = vst [vmem:[%s1211_s7 + $0x168] sm:$0xff] %v681_v7 }
 0x10c   : > { %v1002_v8 = vpop.f32.mrf.mxu0  ;;  %v1034_v9 = vpop.f32.mrf.mxu1 }
 0x10d   : > { %775 = vst [vmem:[%s1211_s7 + $0x90] sm:$0xff] %v1002_v8  ;;  %807 = vst [vmem:[%s1211_s7 + $0x190] sm:$0xff] %v1034_v9 }
 0x10e   : > { %v566_v10 = vpop.f32.mrf.mxu0  ;;  %v694_v11 = vpop.f32.mrf.mxu1 }
 0x10f   : > { %773 = vst [vmem:[%s1211_s7 + $0x80] sm:$0xff] %v566_v10  ;;  %805 = vst [vmem:[%s1211_s7 + $0x180] sm:$0xff] %v694_v11 }
 0x110   : > { %v1003_v12 = vpop.f32.mrf.mxu0  ;;  %v1035_v13 = vpop.f32.mrf.mxu1 }
 0x111   : > { %776 = vst [vmem:[%s1211_s7 + $0x98] sm:$0xff] %v1003_v12  ;;  %808 = vst [vmem:[%s1211_s7 + $0x198] sm:$0xff] %v1035_v13 }
 0x112   : > { %v569_v14 = vpop.f32.mrf.mxu0  ;;  %v697_v15 = vpop.f32.mrf.mxu1 }
 0x113   : > { %774 = vst [vmem:[%s1211_s7 + $0x88] sm:$0xff] %v569_v14  ;;  %806 = vst [vmem:[%s1211_s7 + $0x188] sm:$0xff] %v697_v15 }
 0x114   : > { %v1006_v16 = vpop.f32.mrf.mxu0  ;;  %v1038_v17 = vpop.f32.mrf.mxu1 }
 0x115   : > { %779 = vst [vmem:[%s1211_s7 + $0xb0] sm:$0xff] %v1006_v16  ;;  %811 = vst [vmem:[%s1211_s7 + $0x1b0] sm:$0xff] %v1038_v17 }
 0x116   : > { %v582_v18 = vpop.f32.mrf.mxu0  ;;  %v710_v19 = vpop.f32.mrf.mxu1 }
 0x117   : > { %777 = vst [vmem:[%s1211_s7 + $0xa0] sm:$0xff] %v582_v18  ;;  %809 = vst [vmem:[%s1211_s7 + $0x1a0] sm:$0xff] %v710_v19 }
 0x118   : > { %v1007_v20 = vpop.f32.mrf.mxu0  ;;  %v1039_v21 = vpop.f32.mrf.mxu1 }
 0x119   : > { %780 = vst [vmem:[%s1211_s7 + $0xb8] sm:$0xff] %v1007_v20  ;;  %812 = vst [vmem:[%s1211_s7 + $0x1b8] sm:$0xff] %v1039_v21 }
 0x11a   : > { %v585_v22 = vpop.f32.mrf.mxu0  ;;  %v713_v23 = vpop.f32.mrf.mxu1 }
 0x11b   : > { %778 = vst [vmem:[%s1211_s7 + $0xa8] sm:$0xff] %v585_v22  ;;  %810 = vst [vmem:[%s1211_s7 + $0x1a8] sm:$0xff] %v713_v23 }
 0x11c   : > { %v1010_v24 = vpop.f32.mrf.mxu0  ;;  %v1042_v25 = vpop.f32.mrf.mxu1 }
 0x11d   : > { %783 = vst [vmem:[%s1211_s7 + $0xd0] sm:$0xff] %v1010_v24  ;;  %815 = vst [vmem:[%s1211_s7 + $0x1d0] sm:$0xff] %v1042_v25 }
 0x11e   : > { %v598_v26 = vpop.f32.mrf.mxu0  ;;  %v726_v27 = vpop.f32.mrf.mxu1 }
 0x11f   : > { %781 = vst [vmem:[%s1211_s7 + $0xc0] sm:$0xff] %v598_v26  ;;  %813 = vst [vmem:[%s1211_s7 + $0x1c0] sm:$0xff] %v726_v27 }
 0x120   : > { %v1011_v28 = vpop.f32.mrf.mxu0  ;;  %v1043_v29 = vpop.f32.mrf.mxu1 }
 0x121   : > { %784 = vst [vmem:[%s1211_s7 + $0xd8] sm:$0xff] %v1011_v28  ;;  %816 = vst [vmem:[%s1211_s7 + $0x1d8] sm:$0xff] %v1043_v29 }
 0x122   : > { %v601_v30 = vpop.f32.mrf.mxu0  ;;  %v729_v31 = vpop.f32.mrf.mxu1 }
 0x123   : > { %782 = vst [vmem:[%s1211_s7 + $0xc8] sm:$0xff] %v601_v30  ;;  %814 = vst [vmem:[%s1211_s7 + $0x1c8] sm:$0xff] %v729_v31 }
 0x124   : > { %v1014_v32 = vpop.f32.mrf.mxu0  ;;  %v1046_v33 = vpop.f32.mrf.mxu1 }
 0x125   : > { %787 = vst [vmem:[%s1211_s7 + $0xf0] sm:$0xff] %v1014_v32  ;;  %819 = vst [vmem:[%s1211_s7 + $0x1f0] sm:$0xff] %v1046_v33 }
 0x126   : > { %v614_v34 = vpop.f32.mrf.mxu0  ;;  %v742_v35 = vpop.f32.mrf.mxu1 }
 0x127   : > { %785 = vst [vmem:[%s1211_s7 + $0xe0] sm:$0xff] %v614_v34  ;;  %817 = vst [vmem:[%s1211_s7 + $0x1e0] sm:$0xff] %v742_v35 }
 0x128   : > { %v1015_v36 = vpop.f32.mrf.mxu0  ;;  %v1047_v37 = vpop.f32.mrf.mxu1 }
 0x129   : > { %788 = vst [vmem:[%s1211_s7 + $0xf8] sm:$0xff] %v1015_v36  ;;  %820 = vst [vmem:[%s1211_s7 + $0x1f8] sm:$0xff] %v1047_v37 }
 0x12a   : > { %v617_v38 = vpop.f32.mrf.mxu0  ;;  %v745_v39 = vpop.f32.mrf.mxu1 }
 0x12b   : > { %786 = vst [vmem:[%s1211_s7 + $0xe8] sm:$0xff] %v617_v38  ;;  %818 = vst [vmem:[%s1211_s7 + $0x1e8] sm:$0xff] %v745_v39 }
 0x12c PF: > { %s12_s9 = sadd.s32 1, %s1118_s9  }
 0x12d   : > { %p9_p4 = scmp.ge.s32.totalorder %s12_s9, 4  }
 0x12f   :  { %11 = sbr.rel (!%p9_p4) target bundleno = 1 (0x1), region = 58 }

</bundles_post_ra>
